<compile_context>
chip_gen: v7x
topology: tpu7x:2x2x1
jax: 0.10.0
libtpu: 0.0.40
codegen_flags: <defaults>
</compile_context>

<pallas_src>
import functools

import jax
import jax.numpy as jnp
import numpy as np
from jax.experimental import pallas as pl
from jax.experimental.pallas import tpu as pltpu


def _round_up(x, m):
    return (x + m - 1) // m * m


def _pick_tile_m(m, bytes_per_col):
    """Largest lane tile (multiple of 128, capped at 2048) whose double-buffered
    footprint stays well inside per-generation VMEM (queried via get_tpu_info)."""
    try:
        vmem_bytes = pltpu.get_tpu_info().vmem_capacity_bytes
    except Exception:
        vmem_bytes = 64 * 1024 * 1024  # conservative: v7x per-core VMEM
    budget = vmem_bytes // 4           # headroom for compiler scratch etc.
    tm = 128
    while tm < 2048 and (2 * tm) * bytes_per_col * 2 <= budget:
        tm *= 2
    return min(tm, _round_up(m, 128))


def _stats_kernel(xt_ref, w1_ref, wr_ref, stats_ref, *, res_row, ci):
    """Pass 1 (BatchNorm only): per-channel sum / sum-of-squares of the bias-free
    conv1 and res_conv outputs, accumulated across the tiled M axis."""
    @pl.when(pl.program_id(0) == 0)
    def _():
        stats_ref[...] = jnp.zeros_like(stats_ref)

    xt = xt_ref[...]                                                    # (R, TM)
    y = jnp.dot(w1_ref[...], xt, preferred_element_type=jnp.float32)    # (Co, TM)
    r = jnp.dot(wr_ref[...], xt[res_row:res_row + ci, :],
                preferred_element_type=jnp.float32)                     # (Co, TM)
    s = jnp.concatenate(
        [jnp.sum(y, axis=1, keepdims=True),
         jnp.sum(y * y, axis=1, keepdims=True),
         jnp.sum(r, axis=1, keepdims=True),
         jnp.sum(r * r, axis=1, keepdims=True)], axis=1)                # (Co, 4)
    stats_ref[...] = stats_ref[...] + s


def _apply_kernel(xt_ref, w1_ref, wr_ref, sy_ref, ty_ref, sr_ref, tr_ref, a_ref,
                  o_ref, *, res_row, ci):
    """Pass 2: conv1 (single folded matmul) -> affine (BN or bias) -> PReLU,
    residual 1x1 conv on the reused tap -> affine, sum. Lane-dense (Co, TM) output."""
    xt = xt_ref[...]                                                    # (R, TM)
    y = jnp.dot(w1_ref[...], xt, preferred_element_type=jnp.float32)    # (Co, TM)
    y = y * sy_ref[...] + ty_ref[...]
    y = jnp.where(y > 0.0, y, a_ref[...] * y)

    r = jnp.dot(wr_ref[...], xt[res_row:res_row + ci, :],
                preferred_element_type=jnp.float32)                     # (Co, TM)
    r = r * sr_ref[...] + tr_ref[...]

    o_ref[...] = y + r


def ds_tcn_block(x, params, *, kernel_size, stride=1, dilation=1,
                 norm_type=None, eps=1e-5, tile_m=None):
    """x: (N, in_ch, L) float32, PyTorch NCL convention. Returns (N, out_ch, L_out)."""
    N, Ci, L = x.shape
    Co, _, K = params["w1"].shape
    assert K == kernel_size
    pad = (kernel_size - 1) * dilation // 2
    L_out = (L + 2 * pad - dilation * (kernel_size - 1) - 1) // stride + 1
    L_res = (L - 1) // stride + 1
    assert L_out == L_res, "conv1 / res_conv output lengths must match to be summed"
    M = N * L_out

    x32 = x.astype(jnp.float32)
    x_pad = jnp.pad(x32, ((0, 0), (0, 0), (pad, pad)))

    # One strided/dilated tap per kernel position, channels-on-sublanes layout.
    def to_cm(a):                                     # (N, Ci, L_out) -> (Ci, N*L_out)
        return jnp.transpose(a, (1, 0, 2)).reshape(Ci, N * L_out)

    taps = []
    for k in range(kernel_size):
        start = k * dilation
        sl = jax.lax.slice(x_pad, (0, 0, start),
                           (N, Ci, start + (L_out - 1) * stride + 1),
                           (1, 1, stride))
        taps.append(to_cm(sl))

    # Residual 1x1 strided conv reads x[:, :, t*stride]; when pad is a multiple of the
    # dilation that is exactly conv tap k = pad // dilation -> reuse it (no extra DMA).
    if pad % dilation == 0 and (pad // dilation) < kernel_size:
        res_row = (pad // dilation) * Ci
        extra = False
    else:
        xr = jax.lax.slice(x32, (0, 0, 0), (N, Ci, (L_out - 1) * stride + 1),
                           (1, 1, stride))
        taps.append(to_cm(xr))
        res_row = kernel_size * Ci
        extra = True

    x_all = jnp.concatenate(taps, axis=0)             # (R, M)
    R = x_all.shape[0]

    TM = tile_m if tile_m is not None else _pick_tile_m(M, (R + Co) * 4)
    assert TM % 128 == 0
    m_pad = _round_up(M, TM)
    x_all = jnp.pad(x_all, ((0, 0), (0, m_pad - M)))
    G = m_pad // TM

    # Weights in folded-matmul layout; rows ordered as k*Ci + c to match the taps.
    w1 = jnp.transpose(params["w1"], (0, 2, 1)).reshape(Co, kernel_size * Ci)
    if extra:
        w1 = jnp.concatenate([w1, jnp.zeros((Co, Ci), w1.dtype)], axis=1)
    w1 = w1.astype(jnp.float32)                       # (Co, R)
    wr = params["wres"][:, :, 0].astype(jnp.float32)  # (Co, Ci)

    b1 = params["b1"].astype(jnp.float32)
    br = params["bres"].astype(jnp.float32)
    a_p = params["prelu"].reshape(Co, 1).astype(jnp.float32)

    x_spec = pl.BlockSpec((R, TM), lambda g: (0, g))
    w1_spec = pl.BlockSpec((Co, R), lambda g: (0, 0))
    wr_spec = pl.BlockSpec((Co, Ci), lambda g: (0, 0))
    vec_spec = pl.BlockSpec((Co, 1), lambda g: (0, 0))

    use_bn = (norm_type == "BatchNorm")
    if use_bn:
        # Pass 1: global batch statistics (bias-free; BatchNorm cancels the conv bias).
        stats = pl.pallas_call(
            functools.partial(_stats_kernel, res_row=res_row, ci=Ci),
            grid=(G,),
            in_specs=[x_spec, w1_spec, wr_spec],
            out_specs=pl.BlockSpec((Co, 4), lambda g: (0, 0)),
            out_shape=jax.ShapeDtypeStruct((Co, 4), jnp.float32),
            compiler_params=pltpu.CompilerParams(
                dimension_semantics=("arbitrary",)),  # accumulator across the M axis
        )(x_all, w1, wr)

        mean_y, msq_y = stats[:, 0] / M, stats[:, 1] / M
        mean_r, msq_r = stats[:, 2] / M, stats[:, 3] / M
        var_y = jnp.maximum(msq_y - mean_y * mean_y, 0.0)
        var_r = jnp.maximum(msq_r - mean_r * mean_r, 0.0)
        sy = params["bn1_gamma"].astype(jnp.float32) * jax.lax.rsqrt(var_y + eps)
        ty = params["bn1_beta"].astype(jnp.float32) - mean_y * sy
        sr = params["bnr_gamma"].astype(jnp.float32) * jax.lax.rsqrt(var_r + eps)
        tr = params["bnr_beta"].astype(jnp.float32) - mean_r * sr
    else:
        sy = jnp.ones((Co,), jnp.float32)
        ty = b1
        sr = jnp.ones((Co,), jnp.float32)
        tr = br

    sy, ty, sr, tr = (v.reshape(Co, 1).astype(jnp.float32) for v in (sy, ty, sr, tr))

    flops = 2 * m_pad * Co * (R + Ci) + 6 * m_pad * Co
    bytes_accessed = (x_all.size + w1.size + wr.size + 5 * Co + m_pad * Co) * 4
    out_flat = pl.pallas_call(
        functools.partial(_apply_kernel, res_row=res_row, ci=Ci),
        grid=(G,),
        in_specs=[x_spec, w1_spec, wr_spec, vec_spec, vec_spec, vec_spec, vec_spec,
                  vec_spec],
        out_specs=pl.BlockSpec((Co, TM), lambda g: (0, g)),
        out_shape=jax.ShapeDtypeStruct((Co, m_pad), jnp.float32),
        compiler_params=pltpu.CompilerParams(dimension_semantics=("parallel",)),
        cost_estimate=pl.CostEstimate(flops=flops, transcendentals=0,
                                      bytes_accessed=bytes_accessed),
    )(x_all, w1, wr, sy, ty, sr, tr, a_p)

    out = out_flat[:, :M].reshape(Co, N, L_out)
    return jnp.transpose(out, (1, 0, 2))              # (N, Co, L_out)


def ds_tcn_block_reference(x, params, *, kernel_size, stride=1, dilation=1,
                           norm_type=None, eps=1e-5):
    """Independent pure-JAX (XLA conv) reference mirroring the PyTorch forward."""
    pad = (kernel_size - 1) * dilation // 2
    dn = jax.lax.conv_dimension_numbers(x.shape, params["w1"].shape,
                                        ("NCH", "OIH", "NCH"))
    y = jax.lax.conv_general_dilated(x, params["w1"], window_strides=(stride,),
                                     padding=[(pad, pad)], rhs_dilation=(dilation,),
                                     dimension_numbers=dn)
    y = y + params["b1"][None, :, None]
    if norm_type == "BatchNorm":
        mu = jnp.mean(y, axis=(0, 2), keepdims=True)
        var = jnp.mean((y - mu) ** 2, axis=(0, 2), keepdims=True)
        y = (y - mu) / jnp.sqrt(var + eps) * params["bn1_gamma"][None, :, None] \
            + params["bn1_beta"][None, :, None]
    y = jnp.where(y > 0, y, params["prelu"][None, :, None] * y)

    r = jax.lax.conv_general_dilated(x, params["wres"], window_strides=(stride,),
                                     padding=[(0, 0)], dimension_numbers=dn)
    r = r + params["bres"][None, :, None]
    if norm_type == "BatchNorm":
        mu = jnp.mean(r, axis=(0, 2), keepdims=True)
        var = jnp.mean((r - mu) ** 2, axis=(0, 2), keepdims=True)
        r = (r - mu) / jnp.sqrt(var + eps) * params["bnr_gamma"][None, :, None] \
            + params["bnr_beta"][None, :, None]
    return y + r


def _make_params(key, in_ch, out_ch, K):
    ks = jax.random.split(key, 9)
    return {
        "w1":        0.2 * jax.random.normal(ks[0], (out_ch, in_ch, K), jnp.float32),
        "b1":        0.1 * jax.random.normal(ks[1], (out_ch,), jnp.float32),
        "prelu":     jax.random.uniform(ks[2], (out_ch,), jnp.float32, 0.1, 0.4),
        "wres":      0.2 * jax.random.normal(ks[3], (out_ch, in_ch, 1), jnp.float32),
        "bres":      0.1 * jax.random.normal(ks[4], (out_ch,), jnp.float32),
        "bn1_gamma": jax.random.uniform(ks[5], (out_ch,), jnp.float32, 0.5, 1.5),
        "bn1_beta":  0.1 * jax.random.normal(ks[6], (out_ch,), jnp.float32),
        "bnr_gamma": jax.random.uniform(ks[7], (out_ch,), jnp.float32, 0.5, 1.5),
        "bnr_beta":  0.1 * jax.random.normal(ks[8], (out_ch,), jnp.float32),
    }


if __name__ == "__main__":
    # TODO(synk): BatchNorm running-stat buffer updates and the .cuda() device move
    # have no effect on the forward output and are intentionally omitted.
    key = jax.random.PRNGKey(0)
    k_cfg = jax.random.split(key, 3)

    configs = [
        # (in_ch, out_ch, K, stride, dilation, norm, N, L, tile_m)
        (4, 8, 3, 2, 1, "BatchNorm", 2, 16, None),    # original toy shape
        (4, 8, 3, 1, 2, "BatchNorm", 2, 160, 128),    # multi-tile grid: global BN stats
        (3, 16, 5, 2, 1, None,       2, 32, None),    # no-norm path, odd channels
    ]

    for cfg_idx, (ci, co, K, st, dil, norm, N, L, tm) in enumerate(configs):
        kp, kx = jax.random.split(k_cfg[cfg_idx])
        params = _make_params(kp, ci, co, K)
        x = jax.random.normal(kx, (N, ci, L), jnp.float32)

        out = ds_tcn_block(x, params, kernel_size=K, stride=st, dilation=dil,
                           norm_type=norm, tile_m=tm)
        out = jax.block_until_ready(out)

        ref = ds_tcn_block_reference(x, params, kernel_size=K, stride=st,
                                     dilation=dil, norm_type=norm)
        np.testing.assert_allclose(np.asarray(out), np.asarray(ref),
                                   rtol=1e-4, atol=1e-4)

    print("KERNEL_OK")
</pallas_src>

<mosaic_0001>
module attributes {stable_mosaic.version = 11 : i64} {
  func.func @_stats_kernel(%arg0: i32, %arg1: memref<12x128xf32, #tpu.memory_space<vmem>>, %arg2: memref<8x12xf32, #tpu.memory_space<vmem>>, %arg3: memref<8x4xf32, #tpu.memory_space<vmem>>, %arg4: memref<8x4xf32, #tpu.memory_space<vmem>>) attributes {dimension_semantics = [#tpu.dimension_semantics<arbitrary>], iteration_bounds = array<i64: 1>, scalar_prefetch = 0 : i64, scratch_operands = 0 : i64, tpu.core_type = #tpu.core_type<tc>, window_params = [{transform_indices = @transform_0, window_bounds = array<i64: 12, 128>}, {pipeline_mode = #tpu.pipeline_mode<synchronous>, transform_indices = @transform_1, window_bounds = array<i64: 8, 12>}, {pipeline_mode = #tpu.pipeline_mode<synchronous>, transform_indices = @transform_2, window_bounds = array<i64: 8, 4>}, {pipeline_mode = #tpu.pipeline_mode<synchronous>, transform_indices = @transform_3, window_bounds = array<i64: 8, 4>}]} {
    %c0_i32 = arith.constant 0 : i32
    %0 = arith.cmpi eq, %arg0, %c0_i32 : i32
    %1 = arith.extui %0 : i1 to i32
    %c0_i32_0 = arith.constant 0 : i32
    %2 = arith.cmpi ne, %1, %c0_i32_0 : i32
    scf.if %2 {
      %cst_15 = arith.constant 0.000000e+00 : f32
      %23 = vector.broadcast %cst_15 : f32 to vector<8x4xf32>
      %c0_16 = arith.constant 0 : index
      %c0_17 = arith.constant 0 : index
      %24 = vector.load %arg4[%c0_16, %c0_17] : memref<8x4xf32, #tpu.memory_space<vmem>>, vector<8x4xf32>
      tpu.vector_store %arg4[%c0_16, %c0_17], %23 {strides = array<i32>} : memref<8x4xf32, #tpu.memory_space<vmem>>, vector<8x4xf32>,
    } else {
    }
    %c0 = arith.constant 0 : index
    %c0_1 = arith.constant 0 : index
    %3 = vector.load %arg1[%c0, %c0_1] : memref<12x128xf32, #tpu.memory_space<vmem>>, vector<12x128xf32>
    %c0_2 = arith.constant 0 : index
    %c0_3 = arith.constant 0 : index
    %4 = vector.load %arg2[%c0_2, %c0_3] : memref<8x12xf32, #tpu.memory_space<vmem>>, vector<8x12xf32>
    %cst = arith.constant dense<0.000000e+00> : vector<8x128xf32>
    %5 = tpu.matmul %4, %3, %cst {dimension_numbers = #tpu.dot_dimension_numbers<[1], [0], [0], [1], [0, 0, 1, 1], [], []>} : vector<8x12xf32>, vector<12x128xf32>, vector<8x128xf32> -> vector<8x128xf32>
    %c0_4 = arith.constant 0 : index
    %c0_5 = arith.constant 0 : index
    %6 = vector.load %arg3[%c0_4, %c0_5] : memref<8x4xf32, #tpu.memory_space<vmem>>, vector<8x4xf32>
    %7 = vector.extract_strided_slice %3 {offsets = [4, 0], sizes = [4, 128], strides = [1, 1]} : vector<12x128xf32> to vector<4x128xf32>
    %cst_6 = arith.constant dense<0.000000e+00> : vector<8x128xf32>
    %8 = tpu.matmul %6, %7, %cst_6 {dimension_numbers = #tpu.dot_dimension_numbers<[1], [0], [0], [1], [0, 0, 1, 1], [], []>} : vector<8x4xf32>, vector<4x128xf32>, vector<8x128xf32> -> vector<8x128xf32>
    %cst_7 = arith.constant dense<0.000000e+00> : vector<8xf32>
    %9 = vector.multi_reduction <add>, %5, %cst_7 [1] : vector<8x128xf32> to vector<8xf32>
    %10 = vector.shape_cast %9 : vector<8xf32> to vector<8x1xf32>
    %11 = arith.mulf %5, %5 : vector<8x128xf32>
    %cst_8 = arith.constant dense<0.000000e+00> : vector<8xf32>
    %12 = vector.multi_reduction <add>, %11, %cst_8 [1] : vector<8x128xf32> to vector<8xf32>
    %13 = vector.shape_cast %12 : vector<8xf32> to vector<8x1xf32>
    %cst_9 = arith.constant dense<0.000000e+00> : vector<8xf32>
    %14 = vector.multi_reduction <add>, %8, %cst_9 [1] : vector<8x128xf32> to vector<8xf32>
    %15 = vector.shape_cast %14 : vector<8xf32> to vector<8x1xf32>
    %16 = arith.mulf %8, %8 : vector<8x128xf32>
    %cst_10 = arith.constant dense<0.000000e+00> : vector<8xf32>
    %17 = vector.multi_reduction <add>, %16, %cst_10 [1] : vector<8x128xf32> to vector<8xf32>
    %18 = vector.shape_cast %17 : vector<8xf32> to vector<8x1xf32>
    %19 = tpu.concatenate %10, %13, %15, %18 in 1 : vector<8x1xf32>, vector<8x1xf32>, vector<8x1xf32>, vector<8x1xf32> -> vector<8x4xf32>
    %c0_11 = arith.constant 0 : index
    %c0_12 = arith.constant 0 : index
    %20 = vector.load %arg4[%c0_11, %c0_12] : memref<8x4xf32, #tpu.memory_space<vmem>>, vector<8x4xf32>
    %21 = arith.addf %20, %19 : vector<8x4xf32>
    %c0_13 = arith.constant 0 : index
    %c0_14 = arith.constant 0 : index
    %22 = vector.load %arg4[%c0_13, %c0_14] : memref<8x4xf32, #tpu.memory_space<vmem>>, vector<8x4xf32>
    tpu.vector_store %arg4[%c0_13, %c0_14], %21 {strides = array<i32>} : memref<8x4xf32, #tpu.memory_space<vmem>>, vector<8x4xf32>,
    return
  }
  func.func @transform_0(%arg0: i32) -> (i32, i32) {
    %c0_i32 = arith.constant 0 : i32
    %c0_i32_0 = arith.constant 0 : i32
    return %c0_i32, %arg0 : i32, i32
  }
  func.func @transform_1(%arg0: i32) -> (i32, i32) {
    %c0_i32 = arith.constant 0 : i32
    %c0_i32_0 = arith.constant 0 : i32
    %c0_i32_1 = arith.constant 0 : i32
    return %c0_i32, %c0_i32_0 : i32, i32
  }
  func.func @transform_2(%arg0: i32) -> (i32, i32) {
    %c0_i32 = arith.constant 0 : i32
    %c0_i32_0 = arith.constant 0 : i32
    %c0_i32_1 = arith.constant 0 : i32
    return %c0_i32, %c0_i32_0 : i32, i32
  }
  func.func @transform_3(%arg0: i32) -> (i32, i32) {
    %c0_i32 = arith.constant 0 : i32
    %c0_i32_0 = arith.constant 0 : i32
    %c0_i32_1 = arith.constant 0 : i32
    return %c0_i32, %c0_i32_0 : i32, i32
  }
}

</mosaic_0001>

<bundles_post_ra>
// kernel: tpu_custom_call.1
= control target key start
LH: loop header
LB: loop body
LE: loop exit
PB: predicated region body
PF: predicated region fallthrough
CT: control target
= control target key end

     0   :  { %8 = vsyncpa [#allocation3], 0  ;;  %s274_s12 = smov [#allocation2]   ;;  %s331_s0 = inlined_call_operand.hbm [shape: f32[12,128], index: 0, kind: input, shape index: {}]   ;;  %s332_s1 = inlined_call_operand.vmem [shape: f32[8,12], index: 1, kind: input, shape index: {}]   ;;  %s333_s2 = inlined_call_operand.vmem [shape: f32[8,4], index: 2, kind: input, shape index: {}]   ;;  %s334_s3 = inlined_call_operand.vmem [shape: f32[8,4], index: 3, kind: output, shape index: {}]  }
   0x1   :  { %s14_s13 = sshll.u32 %s274_s12, 4  ;;  %s250_s16 = scalar_lea.hbm %s331_s0, 256  ;;  %s15_s13 = int_to_ptr.vmem [resolvable:$true] %s14_s13 }
   0x2   :  { %p251_p0 = scmp.ne.s32.totalorder %s331_s0, %s250_s16  ;;  %p254_p1 = scmp.lt.u32.totalorder %s250_s16, %s331_s0 }
   0x4   :  { %p256_p2 = pnand %p254_p1, %p251_p0 }
   0x6   :  { %259 = shalt.err (!%p256_p2)
}
   0x7   :  { %s260_s21 = scalar_lea.vmem %s15_s13, 256  ;;  %p265_p4 = scmp.lt.s32.totalorder %s15_s13, %s15_s13 }
   0x8   :  { %p261_p3 = scmp.ne.s32.totalorder %s15_s13, %s260_s21  ;;  %p266_p5 = scmp.lt.s32.totalorder %s260_s21, %s260_s21 }
   0xa   :  { %p267_p6 = por %p266_p5, %p265_p4 }
   0xc   :  { %p268_p7 = pnand %p267_p6, %p261_p3 }
   0xe   :  { %271 = shalt.err (!%p268_p7)
}
   0xf   :  { %s275_s22 = smov 128   ;;  %s276_s23 = smov 8  }
  0x10   :  { %20 = dma.hbm_to_vmem [thread:$0]  %s331_s0, 256, %s15_s13, [#allocation3], %s275_s22, %s275_s22, %s276_s23  }
  0x11   :  { %272 = dma.done.wait [#allocation3], 256  }
  0x12   :  { %273 = vsyncadd [#allocation3], 4294967040  ;;  %v277_v0 = vmov 0.0|0.0   ;;  %v278_v1 = vmov 0.0   ;;  %vm32_vm0 = vcmask 31744   ;;  %vm279_vm1 = vmmov 0  }
  0x13   :  { %239 = vmatprep.subr.bf16.mxu0 %v277_v0  ;;  %234 = vmatprep.subr.mxu1 %v278_v1  ;;  %33 = vst.msk [vmem:[%s334_s3] sm:$0xff] %vm32_vm0, %v278_v1  ;;  %vm41_vm2 = vcmask 1043456   ;;  %v34_v2 = vld [vmem:[#allocation2] sm:$0xff]  ;;  %v35_v3 = vld [vmem:[#allocation2 + $0x8] sm:$0xf]  ;;  %vm280_vm3 = vmmov 1  }
  0x14   :  { %231 = vmatprep.mubr.msk.f32.mxu0 %vm279_vm1, %v278_v1  ;;  %236 = vmatprep.mubr.msk.f32.mxu1 %vm279_vm1, %v278_v1  ;;  %vm241_vm4 = vmpackc.low %vm41_vm2, %vm280_vm3  ;;  %v240_v4 = vpack.c.bf16 %v35_v3, %v34_v2  ;;  %v117_v5 = vrot.slane %v34_v2, 4  ;;  %v115_v6 = vld [vmem:[%s333_s2] sm:$0xff]  ;;  %vm37_vm5 = vcmask 97280   ;;  %vm204_vm6 = vcmask 7168  }
  0x15   :  { %v36_v7 = vld [vmem:[%s332_s1] sm:$0xff]  ;;  %vm206_vm7 = vcmask 15360   ;;  %vm208_vm8 = vcmask 23552  }
  0x16   :  { %242 = vmatpush3.bf16.msk.msra.mxu0 %vm241_vm4, %v240_v4  ;;  %235 = vmatpush3.msk.msra.mxu1 %vm41_vm2, %v117_v5 }
  0x17   :  { %237 = vmatmul.mubr.msk.f32.vlgmr.msra.gmra.mrb[0].mxu1 %vm32_vm0, %v115_v6 }
  0x19   :  { %232 = vmatmul.mubr.msk.f32.vlgmr.msra.gmra.mrb[0].mxu0 %vm37_vm5, %v36_v7 }
  0x1a   :  { %v210_v18 = vld [vmem:[%s334_s3] sm:$0xff] }
  0xea   :  { %v190_v8 = vpop.f32.mrb[0].mxu1 }
  0xeb   :  { %199 = vadd.xlane.f32.xlu1 %v190_v8  ;;  %v238_v9 = vpop.f32.mrb[1].mxu1  ;;  %v201_v10 = vmul.f32 %v190_v8, %v190_v8 }
  0xec   :  { %v111_v11 = vpop.f32.mrb[0].mxu0 }
  0xed   :  { %194 = vadd.xlane.f32.xlu0 %v111_v11  ;;  %v233_v12 = vpop.f32.mrb[1].mxu0  ;;  %v196_v13 = vmul.f32 %v111_v11, %v111_v11 }
  0xef   :  { %202 = vadd.xlane.f32.xlu1 %v201_v10 }
  0xf1   :  { %197 = vadd.xlane.f32.xlu0 %v196_v13 }
 0x178   :  { %v200_v14 = vpop.xlane.xlu1 %199 }
 0x17a   :  { %v195_v15 = vpop.xlane.xlu0 %194 }
 0x17c   :  { %v203_v19 = vpop.xlane.xlu1 %202 }
 0x17e   :  { %v198_v16 = vpop.xlane.xlu0 %197 }
 0x17f   :  { %v205_v17 = vsel %vm204_vm6, %v195_v15, %v198_v16 }
 0x180   :  { %v207_v20 = vsel %vm206_vm7, %v205_v17, %v200_v14 }
 0x181   :  { %v209_v21 = vsel %vm208_vm8, %v207_v20, %v203_v19 }
 0x182   :  { %v211_v22 = vadd.f32 %v210_v18, %v209_v21 }
 0x184   :  { %212 = vst.msk [vmem:[%s334_s3] sm:$0xff] %vm32_vm0, %v211_v22 }
 0x185   :  { %217 = vsyncpa [#allocation3], 1 }

</bundles_post_ra>
